<compile_context>
chip_gen: v7x
topology: tpu7x:2x2x1
jax: 0.10.0
libtpu: 0.0.40
codegen_flags: <defaults>
</compile_context>

<pallas_src>
import functools

import numpy as np
import jax
import jax.numpy as jnp
from jax.experimental import pallas as pl
from jax.experimental.pallas import tpu as pltpu


# --------------------------- Fused LSTM + MLP kernel -------------------------
def fused_lstm_mlp_kernel(hseq_ref, data_ref, lstm_ref, mlp_ref, o_ref,
                          *, T, B, H, D, Lp):
    # hseq_ref : (T*B, I)  time-major flattened input sequence
    # data_ref : (B, D)
    # lstm_ref : (I+H+3, 4H) rows = [W_ih*; W_hh*; bias*; act_scale; act_offset]
    #            ('*' = 0.5 folded into the i/f/o gate stripes)
    # mlp_ref  : (D+H+8+Lp+8, Lp) rows = [W1_data; W1_h; b1(8); W2(Lp); b2(8)]
    # o_ref    : (B, Lp)  lane-dense padded logits
    I = hseq_ref.shape[1]
    G = 4 * H

    # --- hoisted loads / broadcasts (outside the unrolled recurrence) --------
    w_ih = lstm_ref[0:I, :]                                   # (I, 4H)
    w_hh = lstm_ref[I:I + H, :]                               # (H, 4H)
    b_z = lstm_ref[I + H:I + H + 1, :]                        # (1, 4H)
    scale = jnp.broadcast_to(lstm_ref[I + H + 1:I + H + 2, :], (B, G))
    offset = jnp.broadcast_to(lstm_ref[I + H + 2:I + H + 3, :], (B, G))

    # Input projection for ALL time steps in one MXU pass (off the serial chain).
    gx = jnp.dot(hseq_ref[...], w_ih, preferred_element_type=jnp.float32) + b_z

    h = jnp.zeros((B, H), jnp.float32)
    c = jnp.zeros((B, H), jnp.float32)

    # Static unroll over the short time axis: full scheduler visibility,
    # state stays in vregs. Gate order matches PyTorch: i, f, g, o.
    for t in range(T):
        pre = gx[t * B:(t + 1) * B, :] + jnp.dot(
            h, w_hh, preferred_element_type=jnp.float32)      # (B, 4H)
        # Single EUP tanh for all four gates; sigmoid(x) = 0.5*tanh(x/2)+0.5
        # (the 0.5 pre-scale is already folded into the i/f/o weight stripes).
        act = jnp.tanh(pre) * scale + offset
        i_g = act[:, 0 * H:1 * H]
        f_g = act[:, 1 * H:2 * H]
        g_g = act[:, 2 * H:3 * H]
        o_g = act[:, 3 * H:4 * H]
        c = f_g * c + i_g * g_g
        h = o_g * jnp.tanh(c)

    # --- MLP head: logits = ReLU([data, h_last] @ W1 + b1) @ W2 + b2 ---------
    # (Dropout == identity at inference; W1 pre-split so no concat is needed.)
    w1d = mlp_ref[0:D, :]
    w1h = mlp_ref[D:D + H, :]
    b1 = mlp_ref[D + H:D + H + 1, :]
    w2 = mlp_ref[D + H + 8:D + H + 8 + Lp, :]
    b2 = mlp_ref[D + H + 8 + Lp:D + H + 8 + Lp + 1, :]

    y = (jnp.dot(data_ref[...], w1d, preferred_element_type=jnp.float32)
         + jnp.dot(h, w1h, preferred_element_type=jnp.float32)
         + b1)
    y = jnp.maximum(y, 0.0)
    o_ref[...] = jnp.dot(y, w2, preferred_element_type=jnp.float32) + b2


# ------------------------- Wrapper / parameter prep --------------------------
def prepare_kernel_params(params, out_pad=128):
    """One-time repacking of raw (PyTorch-equivalent) weights into the two
    packed buffers the fused kernel expects."""
    w_ih, w_hh, b_lstm = params["w_ih"], params["w_hh"], params["b_lstm"]
    I = w_ih.shape[0]
    H = w_hh.shape[0]
    L = params["w1"].shape[1]
    D = params["w1"].shape[0] - H
    Lp = out_pad

    # Per-gate-stripe constants for the fused activation (gate order i,f,g,o):
    # sigmoid gates get pre-scale/scale 0.5 and offset 0.5; tanh gate 1.0/0.0.
    half = jnp.full((H,), 0.5, jnp.float32)
    one = jnp.ones((H,), jnp.float32)
    zero = jnp.zeros((H,), jnp.float32)
    scale = jnp.concatenate([half, half, one, half])[None, :]    # (1, 4H)
    offs = jnp.concatenate([half, half, zero, half])[None, :]    # (1, 4H)

    # LSTM pack: pre-scaled weights/bias + activation scale/offset rows.
    lstm_pack = jnp.concatenate(
        [w_ih * scale, w_hh * scale, b_lstm * scale, scale, offs],
        axis=0).astype(jnp.float32)                              # (I+H+3, 4H)

    # MLP pack: columns zero-padded to Lp=128 lanes (lane-dense matmuls/store);
    # W1 split into data/h parts so cat([data, h_last]) is never materialized.
    w1d = jnp.zeros((D, Lp), jnp.float32).at[:, :L].set(params["w1"][:D])
    w1h = jnp.zeros((H, Lp), jnp.float32).at[:, :L].set(params["w1"][D:])
    b1p = jnp.zeros((8, Lp), jnp.float32).at[0, :L].set(params["b1"][0])
    w2p = jnp.zeros((Lp, Lp), jnp.float32).at[:L, :L].set(params["w2"])
    b2p = jnp.zeros((8, Lp), jnp.float32).at[0, :L].set(params["b2"][0])
    mlp_pack = jnp.concatenate([w1d, w1h, b1p, w2p, b2p], axis=0)  # (D+H+8+Lp+8, Lp)

    return {"lstm_pack": lstm_pack, "mlp_pack": mlp_pack,
            "I": I, "H": H, "D": D, "L": L, "Lp": Lp}


def lstm_approximator_forward(h_sequence, data, kp):
    # h_sequence: (B, T, arch_dim) batch_first, data: (B, data_dim)
    B, T, I = h_sequence.shape
    H, D, L, Lp = kp["H"], kp["D"], kp["L"], kp["Lp"]
    lstm_pack, mlp_pack = kp["lstm_pack"], kp["mlp_pack"]

    # Tiny (~1 KB) time-major flatten so the kernel's hoisted input projection
    # can slice contiguous (B, 4H) row blocks per time step.
    hseq_flat = jnp.transpose(h_sequence, (1, 0, 2)).reshape(T * B, I)

    kernel = functools.partial(fused_lstm_mlp_kernel,
                               T=T, B=B, H=H, D=D, Lp=Lp)

    out_padded = pl.pallas_call(
        kernel,
        out_shape=jax.ShapeDtypeStruct((B, Lp), jnp.float32),
        grid=(1,),
        in_specs=[
            pl.BlockSpec((T * B, I), lambda i: (0, 0)),        # flattened h_seq
            pl.BlockSpec((B, D), lambda i: (0, 0)),            # data
            pl.BlockSpec(lstm_pack.shape, lambda i: (0, 0)),   # packed LSTM consts
            pl.BlockSpec(mlp_pack.shape, lambda i: (0, 0)),    # packed MLP consts
        ],
        out_specs=pl.BlockSpec((B, Lp), lambda i: (0, 0)),
        compiler_params=pltpu.CompilerParams(
            dimension_semantics=("arbitrary",)),
    )(hseq_flat, data, lstm_pack, mlp_pack)

    return out_padded[:, :L]


# ------------------------- Pure-JAX reference (check) ------------------------
def reference_forward(h_sequence, data, params):
    H = params["w_hh"].shape[0]

    def step(carry, x_t):
        h, c = carry
        gates = x_t @ params["w_ih"] + h @ params["w_hh"] + params["b_lstm"][0]
        i_g = jax.nn.sigmoid(gates[:, 0:H])
        f_g = jax.nn.sigmoid(gates[:, H:2 * H])
        g_g = jnp.tanh(gates[:, 2 * H:3 * H])
        o_g = jax.nn.sigmoid(gates[:, 3 * H:4 * H])
        c = f_g * c + i_g * g_g
        h = o_g * jnp.tanh(c)
        return (h, c), None

    B = h_sequence.shape[0]
    h0 = jnp.zeros((B, H), jnp.float32)
    (h_last, _), _ = jax.lax.scan(step, (h0, h0),
                                  jnp.transpose(h_sequence, (1, 0, 2)))
    x = jnp.concatenate([data, h_last], axis=1)
    y = jnp.maximum(x @ params["w1"] + params["b1"][0], 0.0)
    return y @ params["w2"] + params["b2"][0]


# --------------------------------- Main --------------------------------------
if __name__ == "__main__":
    # Small, consistent shapes (module default data_dim=2048 shrunk for demo).
    B, T = 2, 8
    ARCH_DIM = 16          # arch_dim (LSTM input == hidden size)
    DATA_DIM = 256         # data_dim
    DIM_LOGITS = 10        # => else-branch MLP: (arch+data -> 10 -> 10)

    key = jax.random.PRNGKey(0)
    ks = jax.random.split(key, 12)

    kH = 1.0 / np.sqrt(ARCH_DIM)
    kL1 = 1.0 / np.sqrt(ARCH_DIM + DATA_DIM)
    kL2 = 1.0 / np.sqrt(DIM_LOGITS)

    params = {
        # LSTM weights stored (in, 4H); bias = b_ih + b_hh, kept 2D (1, 4H).
        "w_ih": jax.random.uniform(ks[0], (ARCH_DIM, 4 * ARCH_DIM),
                                   jnp.float32, -kH, kH),
        "w_hh": jax.random.uniform(ks[1], (ARCH_DIM, 4 * ARCH_DIM),
                                   jnp.float32, -kH, kH),
        "b_lstm": (jax.random.uniform(ks[2], (1, 4 * ARCH_DIM),
                                      jnp.float32, -kH, kH)
                   + jax.random.uniform(ks[3], (1, 4 * ARCH_DIM),
                                        jnp.float32, -kH, kH)),
        # MLP: Linear(arch+data, 10) -> Dropout -> ReLU -> Linear(10, 10)
        "w1": jax.random.uniform(ks[4], (ARCH_DIM + DATA_DIM, DIM_LOGITS),
                                 jnp.float32, -kL1, kL1),
        "b1": jax.random.uniform(ks[5], (1, DIM_LOGITS), jnp.float32,
                                 -kL1, kL1),
        "w2": jax.random.uniform(ks[6], (DIM_LOGITS, DIM_LOGITS),
                                 jnp.float32, -kL2, kL2),
        "b2": jax.random.uniform(ks[7], (1, DIM_LOGITS), jnp.float32,
                                 -kL2, kL2),
    }

    h_sequence = jax.random.normal(ks[8], (B, T, ARCH_DIM), jnp.float32)
    data = jax.random.normal(ks[9], (B, DATA_DIM), jnp.float32)

    kparams = prepare_kernel_params(params)   # one-time layout prep

    logits = lstm_approximator_forward(h_sequence, data, kparams)
    logits = jax.block_until_ready(logits)

    ref = jax.block_until_ready(reference_forward(h_sequence, data, params))
    assert logits.shape == (B, DIM_LOGITS)
    np.testing.assert_allclose(np.asarray(logits), np.asarray(ref),
                               rtol=1e-5, atol=1e-5)

    print("KERNEL_OK")
</pallas_src>

<mosaic_0001>
module attributes {stable_mosaic.version = 11 : i64} {
  func.func @fused_lstm_mlp_kernel(%arg0: i32, %arg1: memref<16x16xf32, #tpu.memory_space<vmem>>, %arg2: memref<2x256xf32, #tpu.memory_space<vmem>>, %arg3: memref<35x64xf32, #tpu.memory_space<vmem>>, %arg4: memref<416x128xf32, #tpu.memory_space<vmem>>, %arg5: memref<2x128xf32, #tpu.memory_space<vmem>>) attributes {dimension_semantics = [#tpu.dimension_semantics<arbitrary>], iteration_bounds = array<i64: 1>, scalar_prefetch = 0 : i64, scratch_operands = 0 : i64, tpu.core_type = #tpu.core_type<tc>, window_params = [{pipeline_mode = #tpu.pipeline_mode<synchronous>, transform_indices = @transform_0, window_bounds = array<i64: 16, 16>}, {pipeline_mode = #tpu.pipeline_mode<synchronous>, transform_indices = @transform_1, window_bounds = array<i64: 2, 256>}, {pipeline_mode = #tpu.pipeline_mode<synchronous>, transform_indices = @transform_2, window_bounds = array<i64: 35, 64>}, {pipeline_mode = #tpu.pipeline_mode<synchronous>, transform_indices = @transform_3, window_bounds = array<i64: 416, 128>}, {pipeline_mode = #tpu.pipeline_mode<synchronous>, transform_indices = @transform_4, window_bounds = array<i64: 2, 128>}]} {
    %c0 = arith.constant 0 : index
    %c0_0 = arith.constant 0 : index
    %0 = vector.load %arg3[%c0, %c0_0] : memref<35x64xf32, #tpu.memory_space<vmem>>, vector<16x64xf32>
    %c16 = arith.constant 16 : index
    %c0_1 = arith.constant 0 : index
    %1 = vector.load %arg3[%c16, %c0_1] : memref<35x64xf32, #tpu.memory_space<vmem>>, vector<16x64xf32>
    %c32 = arith.constant 32 : index
    %c0_2 = arith.constant 0 : index
    %2 = vector.load %arg3[%c32, %c0_2] : memref<35x64xf32, #tpu.memory_space<vmem>>, vector<1x64xf32>
    %c33 = arith.constant 33 : index
    %c0_3 = arith.constant 0 : index
    %3 = vector.load %arg3[%c33, %c0_3] : memref<35x64xf32, #tpu.memory_space<vmem>>, vector<1x64xf32>
    %4 = vector.shape_cast %3 : vector<1x64xf32> to vector<1x64xf32>
    %5 = vector.broadcast %4 : vector<1x64xf32> to vector<2x64xf32>
    %c34 = arith.constant 34 : index
    %c0_4 = arith.constant 0 : index
    %6 = vector.load %arg3[%c34, %c0_4] : memref<35x64xf32, #tpu.memory_space<vmem>>, vector<1x64xf32>
    %7 = vector.shape_cast %6 : vector<1x64xf32> to vector<1x64xf32>
    %8 = vector.broadcast %7 : vector<1x64xf32> to vector<2x64xf32>
    %c0_5 = arith.constant 0 : index
    %c0_6 = arith.constant 0 : index
    %9 = vector.load %arg1[%c0_5, %c0_6] : memref<16x16xf32, #tpu.memory_space<vmem>>, vector<16x16xf32>
    %cst = arith.constant dense<0.000000e+00> : vector<16x64xf32>
    %10 = tpu.matmul %9, %0, %cst {dimension_numbers = #tpu.dot_dimension_numbers<[1], [0], [0], [1], [0, 0, 1, 1], [], []>} : vector<16x16xf32>, vector<16x64xf32>, vector<16x64xf32> -> vector<16x64xf32>
    %11 = vector.broadcast %2 : vector<1x64xf32> to vector<16x64xf32>
    %12 = arith.addf %10, %11 : vector<16x64xf32>
    %cst_7 = arith.constant 0.000000e+00 : f32
    %13 = vector.broadcast %cst_7 : f32 to vector<2x16xf32>
    %cst_8 = arith.constant 0.000000e+00 : f32
    %14 = vector.broadcast %cst_8 : f32 to vector<2x16xf32>
    %15 = vector.extract_strided_slice %12 {offsets = [0, 0], sizes = [2, 64], strides = [1, 1]} : vector<16x64xf32> to vector<2x64xf32>
    %cst_9 = arith.constant dense<0.000000e+00> : vector<2x64xf32>
    %16 = tpu.matmul %13, %1, %cst_9 {dimension_numbers = #tpu.dot_dimension_numbers<[1], [0], [0], [1], [0, 0, 1, 1], [], []>} : vector<2x16xf32>, vector<16x64xf32>, vector<2x64xf32> -> vector<2x64xf32>
    %17 = arith.addf %15, %16 : vector<2x64xf32>
    %18 = math.tanh %17 : vector<2x64xf32>
    %19 = arith.mulf %18, %5 : vector<2x64xf32>
    %20 = arith.addf %19, %8 : vector<2x64xf32>
    %21 = vector.extract_strided_slice %20 {offsets = [0, 0], sizes = [2, 16], strides = [1, 1]} : vector<2x64xf32> to vector<2x16xf32>
    %22 = vector.extract_strided_slice %20 {offsets = [0, 16], sizes = [2, 16], strides = [1, 1]} : vector<2x64xf32> to vector<2x16xf32>
    %23 = vector.extract_strided_slice %20 {offsets = [0, 32], sizes = [2, 16], strides = [1, 1]} : vector<2x64xf32> to vector<2x16xf32>
    %24 = vector.extract_strided_slice %20 {offsets = [0, 48], sizes = [2, 16], strides = [1, 1]} : vector<2x64xf32> to vector<2x16xf32>
    %25 = arith.mulf %22, %14 : vector<2x16xf32>
    %26 = arith.mulf %21, %23 : vector<2x16xf32>
    %27 = arith.addf %25, %26 : vector<2x16xf32>
    %28 = math.tanh %27 : vector<2x16xf32>
    %29 = arith.mulf %24, %28 : vector<2x16xf32>
    %30 = vector.extract_strided_slice %12 {offsets = [2, 0], sizes = [2, 64], strides = [1, 1]} : vector<16x64xf32> to vector<2x64xf32>
    %cst_10 = arith.constant dense<0.000000e+00> : vector<2x64xf32>
    %31 = tpu.matmul %29, %1, %cst_10 {dimension_numbers = #tpu.dot_dimension_numbers<[1], [0], [0], [1], [0, 0, 1, 1], [], []>} : vector<2x16xf32>, vector<16x64xf32>, vector<2x64xf32> -> vector<2x64xf32>
    %32 = arith.addf %30, %31 : vector<2x64xf32>
    %33 = math.tanh %32 : vector<2x64xf32>
    %34 = arith.mulf %33, %5 : vector<2x64xf32>
    %35 = arith.addf %34, %8 : vector<2x64xf32>
    %36 = vector.extract_strided_slice %35 {offsets = [0, 0], sizes = [2, 16], strides = [1, 1]} : vector<2x64xf32> to vector<2x16xf32>
    %37 = vector.extract_strided_slice %35 {offsets = [0, 16], sizes = [2, 16], strides = [1, 1]} : vector<2x64xf32> to vector<2x16xf32>
    %38 = vector.extract_strided_slice %35 {offsets = [0, 32], sizes = [2, 16], strides = [1, 1]} : vector<2x64xf32> to vector<2x16xf32>
    %39 = vector.extract_strided_slice %35 {offsets = [0, 48], sizes = [2, 16], strides = [1, 1]} : vector<2x64xf32> to vector<2x16xf32>
    %40 = arith.mulf %37, %27 : vector<2x16xf32>
    %41 = arith.mulf %36, %38 : vector<2x16xf32>
    %42 = arith.addf %40, %41 : vector<2x16xf32>
    %43 = math.tanh %42 : vector<2x16xf32>
    %44 = arith.mulf %39, %43 : vector<2x16xf32>
    %45 = vector.extract_strided_slice %12 {offsets = [4, 0], sizes = [2, 64], strides = [1, 1]} : vector<16x64xf32> to vector<2x64xf32>
    %cst_11 = arith.constant dense<0.000000e+00> : vector<2x64xf32>
    %46 = tpu.matmul %44, %1, %cst_11 {dimension_numbers = #tpu.dot_dimension_numbers<[1], [0], [0], [1], [0, 0, 1, 1], [], []>} : vector<2x16xf32>, vector<16x64xf32>, vector<2x64xf32> -> vector<2x64xf32>
    %47 = arith.addf %45, %46 : vector<2x64xf32>
    %48 = math.tanh %47 : vector<2x64xf32>
    %49 = arith.mulf %48, %5 : vector<2x64xf32>
    %50 = arith.addf %49, %8 : vector<2x64xf32>
    %51 = vector.extract_strided_slice %50 {offsets = [0, 0], sizes = [2, 16], strides = [1, 1]} : vector<2x64xf32> to vector<2x16xf32>
    %52 = vector.extract_strided_slice %50 {offsets = [0, 16], sizes = [2, 16], strides = [1, 1]} : vector<2x64xf32> to vector<2x16xf32>
    %53 = vector.extract_strided_slice %50 {offsets = [0, 32], sizes = [2, 16], strides = [1, 1]} : vector<2x64xf32> to vector<2x16xf32>
    %54 = vector.extract_strided_slice %50 {offsets = [0, 48], sizes = [2, 16], strides = [1, 1]} : vector<2x64xf32> to vector<2x16xf32>
    %55 = arith.mulf %52, %42 : vector<2x16xf32>
    %56 = arith.mulf %51, %53 : vector<2x16xf32>
    %57 = arith.addf %55, %56 : vector<2x16xf32>
    %58 = math.tanh %57 : vector<2x16xf32>
    %59 = arith.mulf %54, %58 : vector<2x16xf32>
    %60 = vector.extract_strided_slice %12 {offsets = [6, 0], sizes = [2, 64], strides = [1, 1]} : vector<16x64xf32> to vector<2x64xf32>
    %cst_12 = arith.constant dense<0.000000e+00> : vector<2x64xf32>
    %61 = tpu.matmul %59, %1, %cst_12 {dimension_numbers = #tpu.dot_dimension_numbers<[1], [0], [0], [1], [0, 0, 1, 1], [], []>} : vector<2x16xf32>, vector<16x64xf32>, vector<2x64xf32> -> vector<2x64xf32>
    %62 = arith.addf %60, %61 : vector<2x64xf32>
    %63 = math.tanh %62 : vector<2x64xf32>
    %64 = arith.mulf %63, %5 : vector<2x64xf32>
    %65 = arith.addf %64, %8 : vector<2x64xf32>
    %66 = vector.extract_strided_slice %65 {offsets = [0, 0], sizes = [2, 16], strides = [1, 1]} : vector<2x64xf32> to vector<2x16xf32>
    %67 = vector.extract_strided_slice %65 {offsets = [0, 16], sizes = [2, 16], strides = [1, 1]} : vector<2x64xf32> to vector<2x16xf32>
    %68 = vector.extract_strided_slice %65 {offsets = [0, 32], sizes = [2, 16], strides = [1, 1]} : vector<2x64xf32> to vector<2x16xf32>
    %69 = vector.extract_strided_slice %65 {offsets = [0, 48], sizes = [2, 16], strides = [1, 1]} : vector<2x64xf32> to vector<2x16xf32>
    %70 = arith.mulf %67, %57 : vector<2x16xf32>
    %71 = arith.mulf %66, %68 : vector<2x16xf32>
    %72 = arith.addf %70, %71 : vector<2x16xf32>
    %73 = math.tanh %72 : vector<2x16xf32>
    %74 = arith.mulf %69, %73 : vector<2x16xf32>
    %75 = vector.extract_strided_slice %12 {offsets = [8, 0], sizes = [2, 64], strides = [1, 1]} : vector<16x64xf32> to vector<2x64xf32>
    %cst_13 = arith.constant dense<0.000000e+00> : vector<2x64xf32>
    %76 = tpu.matmul %74, %1, %cst_13 {dimension_numbers = #tpu.dot_dimension_numbers<[1], [0], [0], [1], [0, 0, 1, 1], [], []>} : vector<2x16xf32>, vector<16x64xf32>, vector<2x64xf32> -> vector<2x64xf32>
    %77 = arith.addf %75, %76 : vector<2x64xf32>
    %78 = math.tanh %77 : vector<2x64xf32>
    %79 = arith.mulf %78, %5 : vector<2x64xf32>
    %80 = arith.addf %79, %8 : vector<2x64xf32>
    %81 = vector.extract_strided_slice %80 {offsets = [0, 0], sizes = [2, 16], strides = [1, 1]} : vector<2x64xf32> to vector<2x16xf32>
    %82 = vector.extract_strided_slice %80 {offsets = [0, 16], sizes = [2, 16], strides = [1, 1]} : vector<2x64xf32> to vector<2x16xf32>
    %83 = vector.extract_strided_slice %80 {offsets = [0, 32], sizes = [2, 16], strides = [1, 1]} : vector<2x64xf32> to vector<2x16xf32>
    %84 = vector.extract_strided_slice %80 {offsets = [0, 48], sizes = [2, 16], strides = [1, 1]} : vector<2x64xf32> to vector<2x16xf32>
    %85 = arith.mulf %82, %72 : vector<2x16xf32>
    %86 = arith.mulf %81, %83 : vector<2x16xf32>
    %87 = arith.addf %85, %86 : vector<2x16xf32>
    %88 = math.tanh %87 : vector<2x16xf32>
    %89 = arith.mulf %84, %88 : vector<2x16xf32>
    %90 = vector.extract_strided_slice %12 {offsets = [10, 0], sizes = [2, 64], strides = [1, 1]} : vector<16x64xf32> to vector<2x64xf32>
    %cst_14 = arith.constant dense<0.000000e+00> : vector<2x64xf32>
    %91 = tpu.matmul %89, %1, %cst_14 {dimension_numbers = #tpu.dot_dimension_numbers<[1], [0], [0], [1], [0, 0, 1, 1], [], []>} : vector<2x16xf32>, vector<16x64xf32>, vector<2x64xf32> -> vector<2x64xf32>
    %92 = arith.addf %90, %91 : vector<2x64xf32>
    %93 = math.tanh %92 : vector<2x64xf32>
    %94 = arith.mulf %93, %5 : vector<2x64xf32>
    %95 = arith.addf %94, %8 : vector<2x64xf32>
    %96 = vector.extract_strided_slice %95 {offsets = [0, 0], sizes = [2, 16], strides = [1, 1]} : vector<2x64xf32> to vector<2x16xf32>
    %97 = vector.extract_strided_slice %95 {offsets = [0, 16], sizes = [2, 16], strides = [1, 1]} : vector<2x64xf32> to vector<2x16xf32>
    %98 = vector.extract_strided_slice %95 {offsets = [0, 32], sizes = [2, 16], strides = [1, 1]} : vector<2x64xf32> to vector<2x16xf32>
    %99 = vector.extract_strided_slice %95 {offsets = [0, 48], sizes = [2, 16], strides = [1, 1]} : vector<2x64xf32> to vector<2x16xf32>
    %100 = arith.mulf %97, %87 : vector<2x16xf32>
    %101 = arith.mulf %96, %98 : vector<2x16xf32>
    %102 = arith.addf %100, %101 : vector<2x16xf32>
    %103 = math.tanh %102 : vector<2x16xf32>
    %104 = arith.mulf %99, %103 : vector<2x16xf32>
    %105 = vector.extract_strided_slice %12 {offsets = [12, 0], sizes = [2, 64], strides = [1, 1]} : vector<16x64xf32> to vector<2x64xf32>
    %cst_15 = arith.constant dense<0.000000e+00> : vector<2x64xf32>
    %106 = tpu.matmul %104, %1, %cst_15 {dimension_numbers = #tpu.dot_dimension_numbers<[1], [0], [0], [1], [0, 0, 1, 1], [], []>} : vector<2x16xf32>, vector<16x64xf32>, vector<2x64xf32> -> vector<2x64xf32>
    %107 = arith.addf %105, %106 : vector<2x64xf32>
    %108 = math.tanh %107 : vector<2x64xf32>
    %109 = arith.mulf %108, %5 : vector<2x64xf32>
    %110 = arith.addf %109, %8 : vector<2x64xf32>
    %111 = vector.extract_strided_slice %110 {offsets = [0, 0], sizes = [2, 16], strides = [1, 1]} : vector<2x64xf32> to vector<2x16xf32>
    %112 = vector.extract_strided_slice %110 {offsets = [0, 16], sizes = [2, 16], strides = [1, 1]} : vector<2x64xf32> to vector<2x16xf32>
    %113 = vector.extract_strided_slice %110 {offsets = [0, 32], sizes = [2, 16], strides = [1, 1]} : vector<2x64xf32> to vector<2x16xf32>
    %114 = vector.extract_strided_slice %110 {offsets = [0, 48], sizes = [2, 16], strides = [1, 1]} : vector<2x64xf32> to vector<2x16xf32>
    %115 = arith.mulf %112, %102 : vector<2x16xf32>
    %116 = arith.mulf %111, %113 : vector<2x16xf32>
    %117 = arith.addf %115, %116 : vector<2x16xf32>
    %118 = math.tanh %117 : vector<2x16xf32>
    %119 = arith.mulf %114, %118 : vector<2x16xf32>
    %120 = vector.extract_strided_slice %12 {offsets = [14, 0], sizes = [2, 64], strides = [1, 1]} : vector<16x64xf32> to vector<2x64xf32>
    %cst_16 = arith.constant dense<0.000000e+00> : vector<2x64xf32>
    %121 = tpu.matmul %119, %1, %cst_16 {dimension_numbers = #tpu.dot_dimension_numbers<[1], [0], [0], [1], [0, 0, 1, 1], [], []>} : vector<2x16xf32>, vector<16x64xf32>, vector<2x64xf32> -> vector<2x64xf32>
    %122 = arith.addf %120, %121 : vector<2x64xf32>
    %123 = math.tanh %122 : vector<2x64xf32>
    %124 = arith.mulf %123, %5 : vector<2x64xf32>
    %125 = arith.addf %124, %8 : vector<2x64xf32>
    %126 = vector.extract_strided_slice %125 {offsets = [0, 0], sizes = [2, 16], strides = [1, 1]} : vector<2x64xf32> to vector<2x16xf32>
    %127 = vector.extract_strided_slice %125 {offsets = [0, 16], sizes = [2, 16], strides = [1, 1]} : vector<2x64xf32> to vector<2x16xf32>
    %128 = vector.extract_strided_slice %125 {offsets = [0, 32], sizes = [2, 16], strides = [1, 1]} : vector<2x64xf32> to vector<2x16xf32>
    %129 = vector.extract_strided_slice %125 {offsets = [0, 48], sizes = [2, 16], strides = [1, 1]} : vector<2x64xf32> to vector<2x16xf32>
    %130 = arith.mulf %127, %117 : vector<2x16xf32>
    %131 = arith.mulf %126, %128 : vector<2x16xf32>
    %132 = arith.addf %130, %131 : vector<2x16xf32>
    %133 = math.tanh %132 : vector<2x16xf32>
    %134 = arith.mulf %129, %133 : vector<2x16xf32>
    %c0_17 = arith.constant 0 : index
    %c0_18 = arith.constant 0 : index
    %135 = vector.load %arg4[%c0_17, %c0_18] : memref<416x128xf32, #tpu.memory_space<vmem>>, vector<256x128xf32>
    %c256 = arith.constant 256 : index
    %c0_19 = arith.constant 0 : index
    %136 = vector.load %arg4[%c256, %c0_19] : memref<416x128xf32, #tpu.memory_space<vmem>>, vector<16x128xf32>
    %c272 = arith.constant 272 : index
    %c0_20 = arith.constant 0 : index
    %137 = vector.load %arg4[%c272, %c0_20] : memref<416x128xf32, #tpu.memory_space<vmem>>, vector<1x128xf32>
    %c280 = arith.constant 280 : index
    %c0_21 = arith.constant 0 : index
    %138 = vector.load %arg4[%c280, %c0_21] : memref<416x128xf32, #tpu.memory_space<vmem>>, vector<128x128xf32>
    %c408 = arith.constant 408 : index
    %c0_22 = arith.constant 0 : index
    %139 = vector.load %arg4[%c408, %c0_22] : memref<416x128xf32, #tpu.memory_space<vmem>>, vector<1x128xf32>
    %c0_23 = arith.constant 0 : index
    %c0_24 = arith.constant 0 : index
    %140 = vector.load %arg2[%c0_23, %c0_24] : memref<2x256xf32, #tpu.memory_space<vmem>>, vector<2x256xf32>
    %cst_25 = arith.constant dense<0.000000e+00> : vector<2x128xf32>
    %141 = tpu.matmul %140, %135, %cst_25 {dimension_numbers = #tpu.dot_dimension_numbers<[1], [0], [0], [1], [0, 0, 1, 1], [], []>} : vector<2x256xf32>, vector<256x128xf32>, vector<2x128xf32> -> vector<2x128xf32>
    %cst_26 = arith.constant dense<0.000000e+00> : vector<2x128xf32>
    %142 = tpu.matmul %134, %136, %cst_26 {dimension_numbers = #tpu.dot_dimension_numbers<[1], [0], [0], [1], [0, 0, 1, 1], [], []>} : vector<2x16xf32>, vector<16x128xf32>, vector<2x128xf32> -> vector<2x128xf32>
    %143 = arith.addf %141, %142 : vector<2x128xf32>
    %144 = vector.broadcast %137 : vector<1x128xf32> to vector<2x128xf32>
    %145 = arith.addf %143, %144 : vector<2x128xf32>
    %cst_27 = arith.constant 0.000000e+00 : f32
    %146 = vector.broadcast %cst_27 : f32 to vector<2x128xf32>
    %147 = arith.maximumf %145, %146 : vector<2x128xf32>
    %cst_28 = arith.constant dense<0.000000e+00> : vector<2x128xf32>
    %148 = tpu.matmul %147, %138, %cst_28 {dimension_numbers = #tpu.dot_dimension_numbers<[1], [0], [0], [1], [0, 0, 1, 1], [], []>} : vector<2x128xf32>, vector<128x128xf32>, vector<2x128xf32> -> vector<2x128xf32>
    %149 = vector.broadcast %139 : vector<1x128xf32> to vector<2x128xf32>
    %150 = arith.addf %148, %149 : vector<2x128xf32>
    %c0_29 = arith.constant 0 : index
    %c0_30 = arith.constant 0 : index
    %151 = vector.load %arg5[%c0_29, %c0_30] : memref<2x128xf32, #tpu.memory_space<vmem>>, vector<2x128xf32>
    tpu.vector_store %arg5[%c0_29, %c0_30], %150 {strides = array<i32>} : memref<2x128xf32, #tpu.memory_space<vmem>>, vector<2x128xf32>,
    return
  }
  func.func @transform_0(%arg0: i32) -> (i32, i32) {
    %c0_i32 = arith.constant 0 : i32
    %c0_i32_0 = arith.constant 0 : i32
    %c0_i32_1 = arith.constant 0 : i32
    return %c0_i32, %c0_i32_0 : i32, i32
  }
  func.func @transform_1(%arg0: i32) -> (i32, i32) {
    %c0_i32 = arith.constant 0 : i32
    %c0_i32_0 = arith.constant 0 : i32
    %c0_i32_1 = arith.constant 0 : i32
    return %c0_i32, %c0_i32_0 : i32, i32
  }
  func.func @transform_2(%arg0: i32) -> (i32, i32) {
    %c0_i32 = arith.constant 0 : i32
    %c0_i32_0 = arith.constant 0 : i32
    %c0_i32_1 = arith.constant 0 : i32
    return %c0_i32, %c0_i32_0 : i32, i32
  }
  func.func @transform_3(%arg0: i32) -> (i32, i32) {
    %c0_i32 = arith.constant 0 : i32
    %c0_i32_0 = arith.constant 0 : i32
    %c0_i32_1 = arith.constant 0 : i32
    return %c0_i32, %c0_i32_0 : i32, i32
  }
  func.func @transform_4(%arg0: i32) -> (i32, i32) {
    %c0_i32 = arith.constant 0 : i32
    %c0_i32_0 = arith.constant 0 : i32
    %c0_i32_1 = arith.constant 0 : i32
    return %c0_i32, %c0_i32_0 : i32, i32
  }
}

</mosaic_0001>

<bundles_post_ra>
// kernel: tpu_custom_call.1
= control target key start
LH: loop header
LB: loop body
LE: loop exit
PB: predicated region body
PF: predicated region fallthrough
CT: control target
= control target key end

     0   :  { %9 = vsyncpa [#allocation3], 0  ;;  %s1997_s0 = inlined_call_operand.hbm [shape: f32[16,16], index: 0, kind: input, shape index: {}]   ;;  %s1998_s1 = inlined_call_operand.hbm [shape: f32[2,256], index: 1, kind: input, shape index: {}]   ;;  %s1999_s2 = inlined_call_operand.hbm [shape: f32[35,64], index: 2, kind: input, shape index: {}]   ;;  %s2000_s3 = inlined_call_operand.hbm [shape: f32[416,128], index: 3, kind: input, shape index: {}]   ;;  %s2001_s4 = inlined_call_operand.hbm [shape: f32[2,128], index: 4, kind: output, shape index: {}]  }
   0x1   :  { %10 = vsyncpa [#allocation6], 0 }
   0x2   :  { %11 = vsyncpa [#allocation9], 0 }
   0x3   :  { %12 = vsyncpa [#allocation4], 0  ;;  %s1747_s15 = smov [#allocation5]   ;;  %s1748_s17 = smov [#allocation2]  }
   0x4   :  { %s31_s16 = sshll.u32 %s1747_s15, 4  ;;  %s18_s18 = sshll.u32 %s1748_s17, 4  ;;  %s32_s16 = int_to_ptr.vmem [resolvable:$true] %s31_s16  ;;  %s1786_s18 = int_to_ptr.vmem [resolvable:$true] %s18_s18 }
   0x5   :  { %s1629_s21 = scalar_lea.hbm %s1998_s1, 64 }
   0x6   :  { %p1630_p0 = scmp.ne.s32.totalorder %s1998_s1, %s1629_s21  ;;  %p1633_p1 = scmp.lt.u32.totalorder %s1629_s21, %s1998_s1 }
   0x8   :  { %p1635_p2 = pnand %p1633_p1, %p1630_p0 }
   0xa   :  { %1638 = shalt.err (!%p1635_p2)
}
   0xb   :  { %s1639_s26 = scalar_lea.vmem %s32_s16, 64  ;;  %p1644_p4 = scmp.lt.s32.totalorder %s32_s16, %s32_s16 }
   0xc   :  { %p1640_p3 = scmp.ne.s32.totalorder %s32_s16, %s1639_s26  ;;  %p1645_p5 = scmp.lt.s32.totalorder %s1639_s26, %s1639_s26 }
   0xe   :  { %p1646_p6 = por %p1645_p5, %p1644_p4 }
  0x10   :  { %p1647_p7 = pnand %p1646_p6, %p1640_p3 }
  0x12   :  { %1650 = shalt.err (!%p1647_p7)
}
  0x13   :  { %34 = dma.hbm_to_vmem [thread:$0]  %s1998_s1, 64, %s32_s16, [#allocation6]  }
  0x14   :  { %s1651_s5 = scalar_lea.hbm %s1997_s0, 256 }
  0x15   :  { %p1652_p8 = scmp.ne.s32.totalorder %s1997_s0, %s1651_s5  ;;  %p1655_p9 = scmp.lt.u32.totalorder %s1651_s5, %s1997_s0 }
  0x17   :  { %p1657_p10 = pnand %p1655_p9, %p1652_p8 }
  0x19   :  { %1660 = shalt.err (!%p1657_p10)
}
  0x1a   :  { %s1661_s10 = scalar_lea.vmem %s1786_s18, 256  ;;  %p1666_p12 = scmp.lt.s32.totalorder %s1786_s18, %s1786_s18 }
  0x1b   :  { %p1662_p11 = scmp.ne.s32.totalorder %s1786_s18, %s1661_s10  ;;  %p1667_p13 = scmp.lt.s32.totalorder %s1661_s10, %s1661_s10 }
  0x1d   :  { %p1668_p0 = por %p1667_p13, %p1666_p12 }
  0x1f   :  { %p1669_p1 = pnand %p1668_p0, %p1662_p11 }
  0x21   :  { %1672 = shalt.err (!%p1669_p1)
}
  0x22   :  { %s1749_s1 = smov 128   ;;  %s1750_s11 = smov 8  }
  0x23   :  { %24 = dma.hbm_to_vmem [thread:$0]  %s1997_s0, 256, %s1786_s18, [#allocation3], %s1749_s1, %s1749_s1, %s1750_s11  }
  0x24   :  { %s1751_s14 = smov [#allocation7]   ;;  %s1752_s16 = smov [#allocation8]  }
  0x25   :  { %s40_s15 = sshll.u32 %s1751_s14, 4  ;;  %s52_s17 = sshll.u32 %s1752_s16, 4  ;;  %s41_s15 = int_to_ptr.vmem [resolvable:$true] %s40_s15  ;;  %s1820_s17 = int_to_ptr.vmem [resolvable:$true] %s52_s17 }
  0x26   :  { %s1673_s21 = scalar_lea.hbm %s1999_s2, 640 }
  0x27   :  { %p1674_p2 = scmp.ne.s32.totalorder %s1999_s2, %s1673_s21  ;;  %p1677_p3 = scmp.lt.u32.totalorder %s1673_s21, %s1999_s2 }
  0x29   :  { %p1679_p4 = pnand %p1677_p3, %p1674_p2 }
  0x2b   :  { %1682 = shalt.err (!%p1679_p4)
}
  0x2c   :  { %s1683_s0 = scalar_lea.vmem %s41_s15, 640  ;;  %p1688_p6 = scmp.lt.s32.totalorder %s41_s15, %s41_s15 }
  0x2d   :  { %p1684_p5 = scmp.ne.s32.totalorder %s41_s15, %s1683_s0  ;;  %p1689_p7 = scmp.lt.s32.totalorder %s1683_s0, %s1683_s0 }
  0x2f   :  { %p1690_p8 = por %p1689_p7, %p1688_p6 }
  0x31   :  { %p1691_p9 = pnand %p1690_p8, %p1684_p5 }
  0x33   :  { %1694 = shalt.err (!%p1691_p9)
}
  0x34   :  { %46 = dma.hbm_to_vmem [thread:$0]  %s1999_s2, 640, %s41_s15, [#allocation6], %s1749_s1, %s1749_s1, %s1750_s11  }
  0x35   :  { %s1695_s29 = scalar_lea.hbm %s2000_s3, 6656 }
  0x36   :  { %p1696_p10 = scmp.ne.s32.totalorder %s2000_s3, %s1695_s29  ;;  %p1699_p11 = scmp.lt.u32.totalorder %s1695_s29, %s2000_s3 }
  0x38   :  { %p1701_p12 = pnand %p1699_p11, %p1696_p10 }
  0x3a   :  { %1704 = shalt.err (!%p1701_p12)
}
  0x3b   :  { %s1705_s8 = scalar_lea.vmem %s1820_s17, 6656  ;;  %p1710_p0 = scmp.lt.s32.totalorder %s1820_s17, %s1820_s17 }
  0x3c   :  { %p1706_p13 = scmp.ne.s32.totalorder %s1820_s17, %s1705_s8  ;;  %p1711_p1 = scmp.lt.s32.totalorder %s1705_s8, %s1705_s8 }
  0x3e   :  { %p1712_p2 = por %p1711_p1, %p1710_p0 }
  0x40   :  { %p1713_p3 = pnand %p1712_p2, %p1706_p13 }
  0x42   :  { %1716 = shalt.err (!%p1713_p3)
}
  0x43   :  { %58 = dma.hbm_to_vmem [thread:$0]  %s2000_s3, 6656, %s1820_s17, [#allocation9], %s1749_s1, %s1749_s1, %s1750_s11  }
  0x44   :  { %1739 = dma.done.wait [#allocation3], 256  }
  0x45   :  { %1740 = vsyncadd [#allocation3], 4294967040 }
  0x46   :  { %1741 = dma.done.wait [#allocation6], 704  }
  0x47   :  { %1742 = vsyncadd [#allocation6], 4294966592 }
  0x48   :  { %1743 = dma.done.wait [#allocation9], 6656  }
  0x49   :  { %1744 = vsyncadd [#allocation9], 4294960640  ;;  %v1753_v0 = vmov 0.0|0.0   ;;  %vm1754_vm0 = vmmov 0   ;;  %v1755_v1 = vmov 0.0   ;;  %vm92_vm1 = vcmask 130048  }
  0x4a   :  { %1500 = vmatprep.subr.bf16.mxu1 %v1753_v0  ;;  %1402 = vmatprep.mubr.msk.f32.mxu1 %vm1754_vm0, %v1755_v1  ;;  %v71_v2 = vld [vmem:[#allocation7] sm:$0xff]  ;;  %v72_v3 = vld [vmem:[#allocation7 + $0x8] sm:$0xff]  ;;  %v73_v6 = vld [vmem:[#allocation7 + $0x10] sm:$0xff]  ;;  %s1756_s3 = smov 96   ;;  %s1757_s10 = smov 16  }
  0x4b   :  { %v86_v4 = vld [vmem:[#allocation2] sm:$0xff]  ;;  %v1496_v5 = vpack.c.bf16 %v72_v3, %v71_v2  ;;  %v74_v7 = vld [vmem:[#allocation7 + $0x18] sm:$0xff]  ;;  %v1294_v10 = vld [vmem:[#allocation7 + $0x20] ss:$0 sm:$0xff]  ;;  %s1758_s1 = smov 32   ;;  %s1759_s11 = smov 80  }
  0x4c   :  { %1395 = vmatprep.mubr.msk.f32.mxu0 %vm92_vm1, %v86_v4  ;;  %v1861_v8 = vpack.c.bf16 %v74_v7, %v73_v6  ;;  %v87_v9 = vld [vmem:[#allocation2 + $0x8] sm:$0xff]  ;;  %v1881_v18 = vld [vmem:[#allocation7 + $0x21] ss:$0 sm:$0xff]  ;;  %v1883_v20 = vld [vmem:[#allocation7 + $0x22] ss:$0 sm:$0xff]  ;;  %s1760_s12 = smov [#allocation10]  }
  0x4d   :  { %1497 = vmatprep.subr.bf16.mxu0 %v1496_v5  ;;  %s1281_s13 = sshll.u32 %s1760_s12, 4  ;;  %s1282_s13 = int_to_ptr.vmem [resolvable:$true] %s1281_s13 }
  0x4e   :  { %1499 = vmatpush3.bf16.msra.mxu0 %v1496_v5  ;;  %1502 = vmatpush3.bf16.msra.mxu1 %v1861_v8  ;;  %s1717_s14 = scalar_lea.vmem %s1282_s13, 32  ;;  %p1722_p5 = scmp.lt.s32.totalorder %s1282_s13, %s1282_s13 }
  0x4f   :  { %1503 = vmatprep.subr.bf16.mxu0 %v1753_v0  ;;  %1506 = vmatprep.subr.bf16.mxu1 %v1753_v0  ;;  %p1718_p4 = scmp.ne.s32.totalorder %s1282_s13, %s1717_s14  ;;  %p1723_p6 = scmp.lt.s32.totalorder %s1717_s14, %s1717_s14 }
  0x51   :  { %1396 = vmatmul.mubr.msk.f32.vlgmr.msra.gmra.mrb[0].mxu0 %vm92_vm1, %v87_v9  ;;  %1403 = vmatmul.mubr.f32.vlgmr.msra.gmra.mrb[0].mxu1 %v1755_v1  ;;  %p1724_p7 = por %p1723_p6, %p1722_p5 }
  0x52   :  { %1505 = vmatpush3.bf16.msra.mxu0 %v1861_v8  ;;  %1409 = vmatprep.mubr.msk.f32.mxu0 %vm1754_vm0, %v1755_v1 }
  0x53   :  { %1508 = vmatpush3.bf16.msra.mxu1 %v1861_v8  ;;  %1416 = vmatprep.mubr.msk.f32.mxu1 %vm1754_vm0, %v1755_v1  ;;  %p1725_p8 = pnand %p1724_p7, %p1718_p4 }
  0x54   :  { %1509 = vmatprep.subr.bf16.mxu0 %v1753_v0  ;;  %1512 = vmatprep.subr.bf16.mxu1 %v1753_v0 }
 0x124   :  { %v1397_v11 = vpop.f32.mrb[0].mxu0  ;;  %v243_v12 = vpop.f32.mrb[0].mxu1 }
 0x125   :  { %v1876_v13 = vadd.f32 %v1397_v11, %v1294_v10  ;;  %v165_v14 = vpop.f32.mrb[1].mxu0  ;;  %v1404_v15 = vpop.f32.mrb[1].mxu1 }
 0x126   :  { %v1878_v16 = vadd.f32 %v1294_v10, %v165_v14 }
 0x128   :  { %v247_v17 = vadd.f32 %v243_v12, %v1878_v16 }
 0x12a   :  { %1597 = vtanh.f32 %v247_v17 }
 0x134   :  { %v1598_v19 = vpop.eup %1597 }
 0x135   :  { %v249_v21 = vmul.f32 %v1598_v19, %v1881_v18 }
 0x137   :  { %v250_v22 = vadd.f32 %v1883_v20, %v249_v21 }
 0x139   :  { %253 = vrot.lane.b32.xlu0 %v250_v22, %s1756_s3  ;;  %v251_v25 = vmul.f32 0.0, %v250_v22 }
 0x1ab   :  { %v254_v23 = vpop.permute.xlu0 %253 }
 0x1ac   :  { %v256_v24 = vmul.f32 %v254_v23, %v250_v22 }
 0x1ae   :  { %258 = vrot.lane.b32.xlu0 %v256_v24, %s1757_s10 }
 0x220   :  { %v259_v26 = vpop.permute.xlu0 %258 }
 0x221   :  { %v261_v27 = vadd.f32 %v259_v26, %v251_v25 }
 0x223   :  { %1599 = vtanh.f32 %v261_v27  ;;  %v351_v41 = vrot.slane %v261_v27, 6 }
 0x22d   :  { %v1600_v28 = vpop.eup %1599 }
 0x22e   :  { %264 = vrot.lane.b32.xlu1 %v1600_v28, %s1758_s1 }
 0x2a0   :  { %v265_v29 = vpop.permute.xlu1 %264 }
 0x2a1   :  { %v267_v30 = vmul.f32 %v265_v29, %v250_v22 }
 0x2a3   :  { %269 = vrot.lane.b32.xlu1 %v267_v30, %s1759_s11 }
 0x315   :  { %v270_v31 = vpop.permute.xlu1 %269 }
 0x316   :  { %1410 = vmatmul.mubr.msk.f32.vlgmr.msra.gmra.mrb[2].mxu0 %vm92_vm1, %v270_v31 }
 0x317   :  { %1511 = vmatpush3.bf16.msra.mxu0 %v1861_v8  ;;  %1423 = vmatprep.mubr.msk.f32.mxu0 %vm1754_vm0, %v1755_v1 }
 0x318   :  { %1515 = vmatprep.subr.bf16.mxu0 %v1753_v0 }
 0x3e9   :  { %v339_v32 = vpop.f32.mrb[2].mxu0 }
 0x3ea   :  { %v344_v33 = vrot.slane %v339_v32, 6  ;;  %v1411_v34 = vpop.f32.mrb[3].mxu0 }
 0x3ec   :  { %v346_v35 = vadd.f32 %v344_v33, %v1878_v16 }
 0x3ee   :  { %1601 = vtanh.f32 %v346_v35 }
 0x3f8   :  { %v1602_v36 = vpop.eup %1601 }
 0x3f9   :  { %v348_v37 = vmul.f32 %v1602_v36, %v1881_v18 }
 0x3fb   :  { %v349_v38 = vadd.f32 %v1883_v20, %v348_v37 }
 0x3fd   :  { %355 = vrot.lane.b32.xlu0 %v349_v38, %s1756_s3  ;;  %v353_v42 = vmul.f32 %v351_v41, %v349_v38 }
 0x46f   :  { %v356_v39 = vpop.permute.xlu0 %355 }
 0x470   :  { %v358_v40 = vmul.f32 %v356_v39, %v349_v38 }
 0x472   :  { %360 = vrot.lane.b32.xlu1 %v358_v40, %s1757_s10 }
 0x4e4   :  { %v361_v43 = vpop.permute.xlu1 %360 }
 0x4e5   :  { %v363_v44 = vadd.f32 %v361_v43, %v353_v42 }
 0x4e7   :  { %1603 = vtanh.f32 %v363_v44  ;;  %v454_v59 = vrot.slane %v363_v44, 6 }
 0x4f1   :  { %v1604_v45 = vpop.eup %1603 }
 0x4f2   :  { %366 = vrot.lane.b32.xlu0 %v1604_v45, %s1758_s1 }
 0x564   :  { %v367_v46 = vpop.permute.xlu0 %366 }
 0x565   :  { %v369_v47 = vmul.f32 %v367_v46, %v349_v38 }
 0x567   :  { %v371_v48 = vrot.slane %v369_v47, 2 }
 0x569   :  { %372 = vrot.lane.b32.xlu1 %v371_v48, %s1759_s11 }
 0x5db   :  { %v373_v49 = vpop.permute.xlu1 %372 }
 0x5dc   :  { %1417 = vmatmul.mubr.msk.f32.vlgmr.msra.gmra.mrb[2].mxu1 %vm92_vm1, %v373_v49 }
 0x5dd   :  { %1514 = vmatpush3.bf16.msra.mxu1 %v1861_v8  ;;  %1430 = vmatprep.mubr.msk.f32.mxu1 %vm1754_vm0, %v1755_v1 }
 0x5de   :  { %1518 = vmatprep.subr.bf16.mxu1 %v1753_v0 }
 0x6af   :  { %v442_v50 = vpop.f32.mrb[2].mxu1 }
 0x6b0   :  { %v447_v51 = vrot.slane %v442_v50, 4  ;;  %v1418_v52 = vpop.f32.mrb[3].mxu1 }
 0x6b2   :  { %v449_v53 = vadd.f32 %v447_v51, %v1878_v16 }
 0x6b4   :  { %1605 = vtanh.f32 %v449_v53 }
 0x6be   :  { %v1606_v54 = vpop.eup %1605 }
 0x6bf   :  { %v451_v55 = vmul.f32 %v1606_v54, %v1881_v18 }
 0x6c1   :  { %v452_v56 = vadd.f32 %v1883_v20, %v451_v55 }
 0x6c3   :  { %458 = vrot.lane.b32.xlu0 %v452_v56, %s1756_s3  ;;  %v456_v60 = vmul.f32 %v454_v59, %v452_v56 }
 0x735   :  { %v459_v57 = vpop.permute.xlu0 %458 }
 0x736   :  { %v461_v58 = vmul.f32 %v459_v57, %v452_v56 }
 0x738   :  { %463 = vrot.lane.b32.xlu1 %v461_v58, %s1757_s10 }
 0x7aa   :  { %v464_v61 = vpop.permute.xlu1 %463 }
 0x7ab   :  { %v466_v62 = vadd.f32 %v464_v61, %v456_v60 }
 0x7ad   :  { %1607 = vtanh.f32 %v466_v62  ;;  %v557_v19 = vrot.slane %v466_v62, 6 }
 0x7b7   :  { %v1608_v63 = vpop.eup %1607 }
 0x7b8   :  { %469 = vrot.lane.b32.xlu0 %v1608_v63, %s1758_s1 }
 0x82a   :  { %v470_v2 = vpop.permute.xlu0 %469 }
 0x82b   :  { %v472_v3 = vmul.f32 %v470_v2, %v452_v56 }
 0x82d   :  { %v474_v4 = vrot.slane %v472_v3, 4 }
 0x82f   :  { %475 = vrot.lane.b32.xlu1 %v474_v4, %s1759_s11 }
 0x8a1   :  { %v476_v5 = vpop.permute.xlu1 %475 }
 0x8a2   :  { %1424 = vmatmul.mubr.msk.f32.vlgmr.msra.gmra.mrb[4].mxu0 %vm92_vm1, %v476_v5 }
 0x8a3   :  { %1517 = vmatpush3.bf16.msra.mxu0 %v1861_v8  ;;  %1437 = vmatprep.mubr.msk.f32.mxu0 %vm1754_vm0, %v1755_v1 }
 0x8a4   :  { %1521 = vmatprep.subr.bf16.mxu0 %v1753_v0 }
 0x975   :  { %v545_v6 = vpop.f32.mrb[4].mxu0 }
 0x976   :  { %v550_v7 = vrot.slane %v545_v6, 2  ;;  %v1425_v9 = vpop.f32.mrb[5].mxu0 }
 0x978   :  { %v552_v10 = vadd.f32 %v550_v7, %v1878_v16 }
 0x97a   :  { %1609 = vtanh.f32 %v552_v10 }
 0x984   :  { %v1610_v11 = vpop.eup %1609 }
 0x985   :  { %v554_v12 = vmul.f32 %v1610_v11, %v1881_v18 }
 0x987   :  { %v555_v14 = vadd.f32 %v1883_v20, %v554_v12 }
 0x989   :  { %561 = vrot.lane.b32.xlu0 %v555_v14, %s1756_s3  ;;  %v559_v21 = vmul.f32 %v557_v19, %v555_v14 }
 0x9fb   :  { %v562_v15 = vpop.permute.xlu0 %561 }
 0x9fc   :  { %v564_v17 = vmul.f32 %v562_v15, %v555_v14 }
 0x9fe   :  { %566 = vrot.lane.b32.xlu1 %v564_v17, %s1757_s10 }
 0xa70   :  { %v567_v22 = vpop.permute.xlu1 %566 }
 0xa71   :  { %v569_v23 = vadd.f32 %v567_v22, %v559_v21 }
 0xa73   :  { %1611 = vtanh.f32 %v569_v23  ;;  %v657_v36 = vrot.slane %v569_v23, 6 }
 0xa7d   :  { %v1612_v24 = vpop.eup %1611 }
 0xa7e   :  { %572 = vrot.lane.b32.xlu0 %v1612_v24, %s1758_s1 }
 0xaf0   :  { %v573_v16 = vpop.permute.xlu0 %572 }
 0xaf1   :  { %v575_v25 = vmul.f32 %v573_v16, %v555_v14 }
 0xaf3   :  { %v577_v26 = vrot.slane %v575_v25, 6 }
 0xaf5   :  { %578 = vrot.lane.b32.xlu1 %v577_v26, %s1759_s11 }
 0xb67   :  { %v579_v27 = vpop.permute.xlu1 %578 }
 0xb68   :  { %1431 = vmatmul.mubr.msk.f32.vlgmr.msra.gmra.mrb[4].mxu1 %vm92_vm1, %v579_v27 }
 0xb69   :  { %1520 = vmatpush3.bf16.msra.mxu1 %v1861_v8  ;;  %1444 = vmatprep.mubr.msk.f32.mxu1 %vm1754_vm0, %v1755_v1 }
 0xb6a   :  { %1524 = vmatprep.subr.bf16.mxu1 %v1753_v0 }
 0xc3b   :  { %v648_v28 = vpop.f32.mrb[4].mxu1 }
 0xc3c   :  { %v652_v29 = vadd.f32 %v648_v28, %v1876_v13  ;;  %v1432_v30 = vpop.f32.mrb[5].mxu1 }
 0xc3e   :  { %1613 = vtanh.f32 %v652_v29 }
 0xc48   :  { %v1614_v31 = vpop.eup %1613 }
 0xc49   :  { %v654_v32 = vmul.f32 %v1614_v31, %v1881_v18 }
 0xc4b   :  { %v655_v33 = vadd.f32 %v1883_v20, %v654_v32 }
 0xc4d   :  { %661 = vrot.lane.b32.xlu0 %v655_v33, %s1756_s3  ;;  %v659_v37 = vmul.f32 %v657_v36, %v655_v33  ;;  %v1002_v36 = vld [vmem:[#allocation8 + $0x90] sm:$0xff] }
 0xcbf   :  { %v662_v34 = vpop.permute.xlu0 %661 }
 0xcc0   :  { %v664_v35 = vmul.f32 %v662_v34, %v655_v33  ;;  %v1001_v34 = vld [vmem:[#allocation8 + $0x88] sm:$0xff] }
 0xcc2   :  { %666 = vrot.lane.b32.xlu1 %v664_v35, %s1757_s10 }
 0xd34   :  { %v667_v38 = vpop.permute.xlu1 %666 }
 0xd35   :  { %v669_v39 = vadd.f32 %v667_v38, %v659_v37  ;;  %v1003_v37 = vld [vmem:[#allocation8 + $0x98] sm:$0xff] }
 0xd37   :  { %1615 = vtanh.f32 %v669_v39 }
 0xd41   :  { %v1616_v40 = vpop.eup %1615 }
 0xd42   :  { %672 = vrot.lane.b32.xlu0 %v1616_v40, %s1758_s1  ;;  %v986_v40 = vld [vmem:[#allocation8 + $0x10] sm:$0xff] }
 0xdb4   :  { %v673_v41 = vpop.permute.xlu0 %672 }
 0xdb5   :  { %v675_v42 = vmul.f32 %v673_v41, %v655_v33  ;;  %v1000_v33 = vld [vmem:[#allocation8 + $0x80] sm:$0xff]  ;;  %v987_v41 = vld [vmem:[#allocation8 + $0x18] sm:$0xff] }
 0xdb6   :  { %v1527_v35 = vpack.c.bf16 %v1001_v34, %v1000_v33  ;;  %v1022_v33 = vld [vmem:[#allocation8 + $0x130] sm:$0xff] }
 0xdb7   :  { %677 = vrot.lane.b32.xlu1 %v675_v42, %s1759_s11  ;;  %v1004_v42 = vld [vmem:[#allocation8 + $0xa0] sm:$0xff] }
 0xe29   :  { %v678_v43 = vpop.permute.xlu1 %677 }
 0xe2a   :  { %1438 = vmatmul.mubr.msk.f32.vlgmr.msra.gmra.mrb[6].mxu0 %vm92_vm1, %v678_v43  ;;  %v1005_v43 = vld [vmem:[#allocation8 + $0xa8] sm:$0xff] }
 0xe2b   :  { %1523 = vmatpush3.bf16.msra.mxu0 %v1861_v8  ;;  %1451 = vmatprep.mubr.msk.f32.mxu0 %vm1754_vm0, %v1755_v1  ;;  %v759_v8 = vrot.slane %v669_v39, 6  ;;  %v1531_v39 = vpack.c.bf16 %v1003_v37, %v1002_v36 }
 0xe2c   :  { %1528 = vmatprep.subr.bf16.mxu0 %v1527_v35  ;;  %v1023_v35 = vld [vmem:[#allocation8 + $0x138] sm:$0xff] }
 0xefd   :  { %v747_v44 = vpop.f32.mrb[6].mxu0 }
 0xefe   :  { %v752_v45 = vrot.slane %v747_v44, 6  ;;  %v1439_v46 = vpop.f32.mrb[7].mxu0  ;;  %v1533_v44 = vpack.c.bf16 %v987_v41, %v986_v40  ;;  %v1026_v40 = vld [vmem:[#allocation8 + $0x150] sm:$0xff] }
 0xeff   :  { %v988_v46 = vld [vmem:[#allocation8 + $0x20] sm:$0xff] }
 0xf00   :  { %v754_v47 = vadd.f32 %v752_v45, %v1876_v13  ;;  %v1535_v45 = vpack.c.bf16 %v1005_v43, %v1004_v42  ;;  %v1027_v42 = vld [vmem:[#allocation8 + $0x158] sm:$0xff]  ;;  %v1028_v43 = vld [vmem:[#allocation8 + $0x160] sm:$0xff] }
 0xf02   :  { %1617 = vtanh.f32 %v754_v47  ;;  %v989_v47 = vld [vmem:[#allocation8 + $0x28] sm:$0xff] }
 0xf0c   :  { %v1618_v48 = vpop.eup %1617 }
 0xf0d   :  { %v756_v49 = vmul.f32 %v1618_v48, %v1881_v18  ;;  %v1006_v48 = vld [vmem:[#allocation8 + $0xb0] sm:$0xff] }
 0xf0f   :  { %v757_v50 = vadd.f32 %v1883_v20, %v756_v49  ;;  %v1007_v49 = vld [vmem:[#allocation8 + $0xb8] sm:$0xff] }
 0xf11   :  { %763 = vrot.lane.b32.xlu0 %v757_v50, %s1756_s3  ;;  %v761_v53 = vmul.f32 %v759_v8, %v757_v50  ;;  %v990_v8 = vld [vmem:[#allocation8 + $0x30] sm:$0xff] }
 0xf83   :  { %v764_v51 = vpop.permute.xlu0 %763 }
 0xf84   :  { %v766_v52 = vmul.f32 %v764_v51, %v757_v50  ;;  %v1537_v51 = vpack.c.bf16 %v989_v47, %v988_v46  ;;  %v1031_v47 = vld [vmem:[#allocation8 + $0x178] sm:$0xff] }
 0xf86   :  { %768 = vrot.lane.b32.xlu1 %v766_v52, %s1757_s10  ;;  %v1539_v52 = vpack.c.bf16 %v1007_v49, %v1006_v48  ;;  %v1032_v48 = vld [vmem:[#allocation8 + $0x180] sm:$0xff] }
 0xf87   :  { %v1578_v49 = vpack.c.bf16 %v1032_v48, %v1031_v47 }
 0xff8   :  { %v769_v54 = vpop.permute.xlu1 %768 }
 0xff9   :  { %v771_v55 = vadd.f32 %v769_v54, %v761_v53  ;;  %v991_v53 = vld [vmem:[#allocation8 + $0x38] sm:$0xff]  ;;  %v1008_v54 = vld [vmem:[#allocation8 + $0xc0] sm:$0xff] }
 0xffb   :  { %1619 = vtanh.f32 %v771_v55  ;;  %v862_v9 = vrot.slane %v771_v55, 6  ;;  %v1009_v55 = vld [vmem:[#allocation8 + $0xc8] sm:$0xff] }
0x1005   :  { %v1620_v56 = vpop.eup %1619 }
0x1006   :  { %774 = vrot.lane.b32.xlu0 %v1620_v56, %s1758_s1  ;;  %v1305_v56 = vld.sshfl [vmem:[#allocation5] sm:$0x33 pattern:$0x76325410] }
0x1078   :  { %v775_v57 = vpop.permute.xlu0 %774 }
0x1079   :  { %v777_v58 = vmul.f32 %v775_v57, %v757_v50  ;;  %v1121_v57 = vcombine.high %v1305_v56, %v1305_v56 }
0x107b   :  { %v779_v59 = vrot.slane %v777_v58, 2  ;;  %v1016_v58 = vld [vmem:[#allocation8 + $0x100] sm:$0xff] }
0x107d   :  { %780 = vrot.lane.b32.xlu1 %v779_v59, %s1759_s11  ;;  %v1017_v59 = vld [vmem:[#allocation8 + $0x108] sm:$0xff] }
0x10ef   :  { %v781_v60 = vpop.permute.xlu1 %780 }
0x10f0   :  { %1445 = vmatmul.mubr.msk.f32.vlgmr.msra.gmra.mrb[6].mxu1 %vm92_vm1, %v781_v60  ;;  %v1541_v60 = vpack.c.bf16 %v991_v53, %v990_v8  ;;  %v1306_v8 = vld [vmem:[#allocation8 + $0x110] ss:$0 sm:$0xff] }
0x10f1   :  { %1458 = vmatprep.mubr.msk.f32.mxu1 %vm1754_vm0, %v1755_v1 }
0x11c3   :  { %v850_v61 = vpop.f32.mrb[6].mxu1 }
0x11c4   :  { %v855_v62 = vrot.slane %v850_v61, 4  ;;  %v1446_v63 = vpop.f32.mrb[7].mxu1  ;;  %v1525_v61 = vpack.c.bf16 %v1017_v59, %v1016_v58  ;;  %v1307_v58 = vld [vmem:[#allocation8 + $0x198] ss:$0 sm:$0xff] }
0x11c5   :  { %v992_v63 = vld [vmem:[#allocation8 + $0x40] sm:$0xff] }
0x11c6   :  { %v857_v2 = vadd.f32 %v855_v62, %v1876_v13  ;;  %v1543_v62 = vpack.c.bf16 %v1009_v55, %v1008_v54  ;;  %1526 = vmatpush3.bf16.msra.mxu1 %v1525_v61 }
0x11c7   :  { %1559 = vmatprep.subr.bf16.mxu1 %v1753_v0 }
0x11c8   :  { %1621 = vtanh.f32 %v857_v2  ;;  %v993_v2 = vld [vmem:[#allocation8 + $0x48] sm:$0xff] }
0x11d2   :  { %v1622_v3 = vpop.eup %1621 }
0x11d3   :  { %v859_v4 = vmul.f32 %v1622_v3, %v1881_v18  ;;  %v1010_v3 = vld [vmem:[#allocation8 + $0xd0] sm:$0xff] }
0x11d5   :  { %v860_v5 = vadd.f32 %v1883_v20, %v859_v4  ;;  %v1011_v4 = vld [vmem:[#allocation8 + $0xd8] sm:$0xff] }
0x11d7   :  { %866 = vrot.lane.b32.xlu0 %v860_v5, %s1756_s3  ;;  %v864_v10 = vmul.f32 %v862_v9, %v860_v5  ;;  %v995_v9 = vld [vmem:[#allocation8 + $0x58] sm:$0xff] }
0x1249   :  { %v867_v6 = vpop.permute.xlu0 %866 }
0x124a   :  { %v869_v7 = vmul.f32 %v867_v6, %v860_v5  ;;  %v1547_v6 = vpack.c.bf16 %v1011_v4, %v1010_v3 }
0x124c   :  { %871 = vrot.lane.b32.xlu1 %v869_v7, %s1757_s10  ;;  %v994_v7 = vld [vmem:[#allocation8 + $0x50] sm:$0xff] }
0x12be   :  { %v872_v11 = vpop.permute.xlu1 %871 }
0x12bf   :  { %v874_v12 = vadd.f32 %v872_v11, %v864_v10  ;;  %v1012_v10 = vld [vmem:[#allocation8 + $0xe0] sm:$0xff]  ;;  %v1013_v11 = vld [vmem:[#allocation8 + $0xe8] sm:$0xff] }
0x12c1   :  { %1623 = vtanh.f32 %v874_v12  ;;  %v965_v30 = vrot.slane %v874_v12, 6  ;;  %v1549_v12 = vpack.c.bf16 %v995_v9, %v994_v7 }
0x12cb   :  { %v1624_v14 = vpop.eup %1623 }
0x12cc   :  { %877 = vrot.lane.b32.xlu0 %v1624_v14, %s1758_s1  ;;  %v1551_v14 = vpack.c.bf16 %v1013_v11, %v1012_v10 }
0x133e   :  { %v878_v15 = vpop.permute.xlu0 %877 }
0x133f   :  { %v880_v17 = vmul.f32 %v878_v15, %v860_v5  ;;  %v1545_v5 = vpack.c.bf16 %v993_v2, %v992_v63  ;;  %v996_v15 = vld [vmem:[#allocation8 + $0x60] sm:$0xff] }
0x1341   :  { %v882_v19 = vrot.slane %v880_v17, 4  ;;  %v997_v17 = vld [vmem:[#allocation8 + $0x68] sm:$0xff] }
0x1343   :  { %883 = vrot.lane.b32.xlu1 %v882_v19, %s1759_s11  ;;  %v1014_v19 = vld [vmem:[#allocation8 + $0xf0] sm:$0xff] }
0x13b5   :  { %v884_v21 = vpop.permute.xlu1 %883 }
0x13b6   :  { %1452 = vmatmul.mubr.msk.f32.vlgmr.msra.gmra.mrb[8].mxu0 %vm92_vm1, %v884_v21  ;;  %v1015_v21 = vld [vmem:[#allocation8 + $0xf8] sm:$0xff] }
0x13b7   :  { %1188 = vmatprep.mubr.f32.mxu0 %v1121_v57 }
0x1489   :  { %v953_v22 = vpop.f32.mrb[8].mxu0 }
0x148a   :  { %v958_v23 = vrot.slane %v953_v22, 2  ;;  %v1453_v24 = vpop.f32.mrb[9].mxu0  ;;  %v1553_v22 = vpack.c.bf16 %v997_v17, %v996_v15 }
0x148b   :  { %v998_v24 = vld [vmem:[#allocation8 + $0x70] sm:$0xff] }
0x148c   :  { %v960_v16 = vadd.f32 %v958_v23, %v1876_v13  ;;  %v1555_v23 = vpack.c.bf16 %v1015_v21, %v1014_v19 }
0x148e   :  { %1625 = vtanh.f32 %v960_v16  ;;  %v999_v16 = vld [vmem:[#allocation8 + $0x78] sm:$0xff] }
0x1498   :  { %v1626_v25 = vpop.eup %1625 }
0x1499   :  { %v962_v26 = vmul.f32 %v1626_v25, %v1881_v18  ;;  %v984_v18 = vld [vmem:[#allocation8] sm:$0xff]  ;;  %v1557_v25 = vpack.c.bf16 %v999_v16, %v998_v24 }
0x149b   :  { %v1964_v27 = vadd.f32 %v1883_v20, %v962_v26  ;;  %v985_v20 = vld [vmem:[#allocation8 + $0x8] sm:$0xff] }
0x149c   :  { %v1529_v38 = vpack.c.bf16 %v985_v20, %v984_v18 }
0x149d   :  { %969 = vrot.lane.b32.xlu0 %v1964_v27, %s1756_s3  ;;  %v967_v31 = vmul.f32 %v965_v30, %v1964_v27  ;;  %v1019_v30 = vld [vmem:[#allocation8 + $0x118] sm:$0xff] }
0x149e   :  { %1530 = vmatpush3.bf16.msra.mxu0 %v1529_v38 }
0x149f   :  { %1532 = vmatprep.subr.bf16.mxu0 %v1531_v39  ;;  %v1025_v39 = vld [vmem:[#allocation8 + $0x148] sm:$0xff] }
0x14a0   :  { %v1569_v41 = vpack.c.bf16 %v1026_v40, %v1025_v39 }
0x14a2   :  { %1534 = vmatpush3.bf16.msra.mxu0 %v1533_v44  ;;  %v1029_v44 = vld [vmem:[#allocation8 + $0x168] sm:$0xff] }
0x14a3   :  { %1536 = vmatprep.subr.bf16.mxu0 %v1535_v45  ;;  %v1030_v45 = vld [vmem:[#allocation8 + $0x170] sm:$0xff] }
0x14a4   :  { %v1575_v46 = vpack.c.bf16 %v1030_v45, %v1029_v44 }
0x14a6   :  { %1538 = vmatpush3.bf16.msra.mxu0 %v1537_v51  ;;  %v1034_v51 = vld [vmem:[#allocation8 + $0x190] sm:$0xff] }
0x14a7   :  { %1540 = vmatprep.subr.bf16.mxu0 %v1539_v52 }
0x14aa   :  { %1542 = vmatpush3.bf16.msra.mxu0 %v1541_v60 }
0x14ab   :  { %1544 = vmatprep.subr.bf16.mxu0 %v1543_v62 }
0x14ae   :  { %1546 = vmatpush3.bf16.msra.mxu0 %v1545_v5 }
0x14af   :  { %1548 = vmatprep.subr.bf16.mxu0 %v1547_v6 }
0x14b2   :  { %1550 = vmatpush3.bf16.msra.mxu0 %v1549_v12 }
0x14b3   :  { %1552 = vmatprep.subr.bf16.mxu0 %v1551_v14 }
0x14b6   :  { %1554 = vmatpush3.bf16.msra.mxu0 %v1553_v22 }
0x14b7   :  { %1556 = vmatprep.subr.bf16.mxu0 %v1555_v23 }
0x14ba   :  { %1558 = vmatpush3.bf16.msra.mxu0 %v1557_v25 }
0x14bd   :  { %1189 = vmatmul.mubr.f32.vlgmr.msra.gmra.mrb[10].mxu0 %v1305_v56 }
0x150f   :  { %v970_v28 = vpop.permute.xlu0 %969 }
0x1510   :  { %v972_v29 = vmul.f32 %v970_v28, %v1964_v27 }
0x1512   :  { %974 = vrot.lane.b32.xlu1 %v972_v29, %s1757_s10 }
0x1584   :  { %v975_v32 = vpop.permute.xlu1 %974 }
0x1585   :  { %v977_v13 = vadd.f32 %v975_v32, %v967_v31  ;;  %v1020_v31 = vld [vmem:[#allocation8 + $0x120] sm:$0xff] }
0x1586   :  { %v1560_v32 = vpack.c.bf16 %v1020_v31, %v1019_v30 }
0x1587   :  { %1627 = vtanh.f32 %v977_v13  ;;  %v1021_v13 = vld [vmem:[#allocation8 + $0x128] sm:$0xff] }
0x1588   :  { %v1563_v18 = vpack.c.bf16 %v1022_v33, %v1021_v13 }
0x1590   :  { %v1371_v20 = vpop.f32.mrb[10].mxu0 }
0x1591   :  { %v1628_v50 = vpop.eup %1627  ;;  %v1372_v36 = vpop.f32.mrb[11].mxu0 }
0x1592   :  { %980 = vrot.lane.b32.xlu0 %v1628_v50, %s1758_s1  ;;  %v1373_v38 = vadd.f32 %v1372_v36, %v1371_v20  ;;  %v1033_v50 = vld [vmem:[#allocation8 + $0x188] sm:$0xff] }
0x1593   :  { %v1581_v52 = vpack.c.bf16 %v1034_v51, %v1033_v50 }
0x1604   :  { %v981_v26 = vpop.permute.xlu0 %980 }
0x1605   :  { %v983_v28 = vmul.f32 %v981_v26, %v1964_v27  ;;  %v1024_v27 = vld [vmem:[#allocation8 + $0x140] sm:$0xff] }
0x1606   :  { %v1566_v37 = vpack.c.bf16 %v1024_v27, %v1023_v35 }
0x1607   :  { %v1038_v29 = vrot.slane %v983_v28, 6 }
0x1609   :  { %1039 = vrot.lane.b32.xlu1 %v1038_v29, %s1759_s11 }
0x167b   :  { %v1040_v34 = vpop.permute.xlu1 %1039 }
0x167c   :  { %1459 = vmatmul.mubr.msk.f32.vlgmr.msra.gmra.mrb[8].mxu1 %vm92_vm1, %v1040_v34 }
0x167d   :  { %1561 = vmatpush3.bf16.msra.mxu1 %v1560_v32  ;;  %1493 = vmatprep.mubr.msk.f32.mxu1 %vm1754_vm0, %v1755_v1  ;;  %v1572_v1 = vpack.c.bf16 %v1028_v43, %v1027_v42 }
0x167e   :  { %1562 = vmatprep.subr.bf16.mxu1 %v1753_v0 }
0x1681   :  { %1564 = vmatpush3.bf16.msra.mxu1 %v1563_v18 }
0x1682   :  { %1565 = vmatprep.subr.bf16.mxu1 %v1753_v0 }
0x1685   :  { %1567 = vmatpush3.bf16.msra.mxu1 %v1566_v37 }
0x1686   :  { %1568 = vmatprep.subr.bf16.mxu1 %v1753_v0 }
0x1689   :  { %1570 = vmatpush3.bf16.msra.mxu1 %v1569_v41 }
0x168a   :  { %1571 = vmatprep.subr.bf16.mxu1 %v1753_v0 }
0x168d   :  { %1573 = vmatpush3.bf16.msra.mxu1 %v1572_v1 }
0x168e   :  { %1574 = vmatprep.subr.bf16.mxu1 %v1753_v0 }
0x1691   :  { %1576 = vmatpush3.bf16.msra.mxu1 %v1575_v46 }
0x1692   :  { %1577 = vmatprep.subr.bf16.mxu1 %v1753_v0 }
0x1695   :  { %1579 = vmatpush3.bf16.msra.mxu1 %v1578_v49 }
0x1696   :  { %1580 = vmatprep.subr.bf16.mxu1 %v1753_v0 }
0x1699   :  { %1582 = vmatpush3.bf16.msra.mxu1 %v1581_v52 }
0x174f   :  { %v1109_v53 = vpop.f32.mrb[8].mxu1 }
0x1750   :  { %v1191_v54 = vadd.f32 %v1373_v38, %v1109_v53  ;;  %v1460_v55 = vpop.f32.mrb[9].mxu1 }
0x1752   :  { %v1198_v56 = vadd.f32 %v1306_v8, %v1191_v54 }
0x1754   :  { %v1199_v57 = vmax.f32 %v1198_v56, 0.0 }
0x1756   :  { %1494 = vmatmul.mubr.f32.vlgmr.msra.gmra.mrb[10].mxu1 %v1199_v57 }
0x1829   :  { %v1270_v59 = vpop.f32.mrb[10].mxu1 }
0x182a   :  { %v1271_v60 = vadd.f32 %v1307_v58, %v1270_v59  ;;  %v1495_v61 = vpop.f32.mrb[11].mxu1 }
0x182c   :  { %1274 = vst [vmem:[#allocation10] sm:$0x3] %v1271_v60 }
0x182d   :  { %1728 = shalt.err (!%p1725_p8)
}
0x182e   :  { %s1729_s17 = scalar_lea.hbm %s2001_s4, 32 }
0x182f   :  { %p1730_p9 = scmp.ne.s32.totalorder %s2001_s4, %s1729_s17  ;;  %p1733_p10 = scmp.lt.u32.totalorder %s1729_s17, %s2001_s4 }
0x1831   :  { %p1735_p11 = pnand %p1733_p10, %p1730_p9 }
0x1833   :  { %1738 = shalt.err (!%p1735_p11)
}
0x1834   :  { %1284 = dma.vmem_to_hbm [thread:$0]  %s1282_s13, 32, %s2001_s4, [#allocation4]  }
0x1835   :  { %1745 = dma.done.wait [#allocation4], 32  }
0x1836   :  { %1746 = vsyncadd [#allocation4], 4294967264 }
0x1837   :  { %1288 = vsyncpa [#allocation3], 1 }
0x1838   :  { %1289 = vsyncpa [#allocation6], 1 }
0x1839   :  { %1290 = vsyncpa [#allocation9], 1 }
0x183a   :  { %1291 = vsyncpa [#allocation4], 1 }

</bundles_post_ra>
